<compile_context>
chip_gen: v7x
topology: tpu7x:2x2x1
jax: 0.10.0
libtpu: 0.0.40
codegen_flags: <defaults>
</compile_context>

<pallas_src>
import jax
import jax.numpy as jnp
from jax.experimental import pallas as pl
from jax.experimental.pallas import tpu as pltpu

LANE = 128


def _round_up(n, m):
    return ((n + m - 1) // m) * m


def _silu_bf16(v):
    """SiLU evaluated in bf16 (feeds the next bf16 MXU matmul directly)."""
    vb = v.astype(jnp.bfloat16)
    return vb * jax.nn.sigmoid(vb)


# ----------------------------------------------------------------------------
# Kernel
# ----------------------------------------------------------------------------
def _make_kernel(P1, P2, P3):
    def kernel(x_ref, w1_ref, w2_ref, w3_ref, w4m_ref, w4s_ref,
               vec_ref, b4_ref, o_ref):
        x32 = x_ref[...]                              # [TM, in_feats] f32
        xb = x32.astype(jnp.bfloat16)

        b1 = vec_ref[0:1, :P1]
        b2 = vec_ref[1:2, :P2]
        b3 = vec_ref[2:3, :P3]
        s3 = vec_ref[3:4, :P3]
        t3 = vec_ref[4:5, :P3]

        # Layer 1: Linear -> SiLU                    (Dropout == id in eval)
        h = _silu_bf16(
            jnp.dot(xb, w1_ref[...], preferred_element_type=jnp.float32) + b1)
        # Layer 2: (BN1-folded) Linear -> SiLU
        h = _silu_bf16(
            jnp.dot(h, w2_ref[...], preferred_element_type=jnp.float32) + b2)
        # Layer 3: (BN2-folded) Linear -> SiLU -> BN3 (cannot fold past SiLU)
        h = _silu_bf16(
            jnp.dot(h, w3_ref[...], preferred_element_type=jnp.float32) + b3)
        h = _silu_bf16(h.astype(jnp.float32) * s3 + t3)

        # out = silu(cat(h, x)) @ W4 + b4, split into the two halves of W4.
        acc = (jnp.dot(h, w4m_ref[...], preferred_element_type=jnp.float32)
               + jnp.dot(_silu_bf16(x32), w4s_ref[...],
                         preferred_element_type=jnp.float32)
               + b4_ref[...])
        o_ref[...] = acc.astype(o_ref.dtype)

    return kernel


# ----------------------------------------------------------------------------
# Wrapper
# ----------------------------------------------------------------------------
def skipnn_forward(x, folded, *, tm=1024):
    """x: [N, in_feats] f32.  folded: dict from fold_and_pad_params."""
    N, in_feats = x.shape
    out = folded["w4m"].shape[1]
    P1, P2, P3 = folded["dims"]

    # Batch tile: multiple of 8 sublanes, at most `tm`, capped at ceil(N/2)
    # so there are >= 2 grid steps when N > 8 (v7x megacore sharding).
    half = _round_up(max((N + 1) // 2, 1), 8)
    tm_eff = max(8, min(tm, half))
    n_pad = _round_up(max(N, 1), tm_eff)
    x_p = x if n_pad == N else jnp.pad(x, ((0, n_pad - N), (0, 0)))

    weights = (folded["w1"], folded["w2"], folded["w3"],
               folded["w4m"], folded["w4s"], folded["vec"], folded["b4"])

    def resident(a):
        nd = a.ndim
        return pl.BlockSpec(a.shape, lambda i, _nd=nd: (0,) * _nd)

    y_p = pl.pallas_call(
        _make_kernel(P1, P2, P3),
        out_shape=jax.ShapeDtypeStruct((n_pad, out), jnp.float32),
        grid=(n_pad // tm_eff,),
        in_specs=([pl.BlockSpec((tm_eff, in_feats), lambda i: (i, 0))]
                  + [resident(a) for a in weights]),
        out_specs=pl.BlockSpec((tm_eff, out), lambda i: (i, 0)),
        compiler_params=pltpu.CompilerParams(
            dimension_semantics=("parallel",),
            vmem_limit_bytes=32 * 1024 * 1024,
        ),
    )(x_p, *weights)

    return y_p[:N]


# ----------------------------------------------------------------------------
# Parameter construction (raw, PyTorch-equivalent) and fold+pad preprocessing
# ----------------------------------------------------------------------------
def make_raw_params(key, in_feats, h1, h2, h3, out=1):
    """Deterministic synthetic parameters matching the torch module layout
    (Linear weights stored pre-transposed as [in, out])."""
    ks = jax.random.split(key, 20)

    def lin(kw, kb, fan_in, fan_out):
        w = jax.random.normal(kw, (fan_in, fan_out), jnp.float32) * 0.1
        b = jax.random.normal(kb, (1, fan_out), jnp.float32) * 0.1
        return w, b

    def bn(kg, kb, km, kv, feats):
        gamma = 1.0 + 0.1 * jax.random.normal(kg, (1, feats), jnp.float32)
        beta = 0.1 * jax.random.normal(kb, (1, feats), jnp.float32)
        mean = 0.1 * jax.random.normal(km, (1, feats), jnp.float32)
        var = jnp.abs(jax.random.normal(kv, (1, feats), jnp.float32)) + 0.5
        return (gamma, beta, mean, var)

    w1, b1 = lin(ks[0], ks[1], in_feats, h1)
    bn1 = bn(ks[2], ks[3], ks[4], ks[5], h1)
    w2, b2 = lin(ks[6], ks[7], h1, h2)
    bn2 = bn(ks[8], ks[9], ks[10], ks[11], h2)
    w3, b3 = lin(ks[12], ks[13], h2, h3)
    bn3 = bn(ks[14], ks[15], ks[16], ks[17], h3)
    w4, b4 = lin(ks[18], ks[19], h3 + in_feats, out)
    return dict(w1=w1, b1=b1, bn1=bn1, w2=w2, b2=b2, bn2=bn2,
                w3=w3, b3=b3, bn3=bn3, w4=w4, b4=b4)


def fold_and_pad_params(raw, eps=1e-5, lane=LANE):
    """Fold BN1->layer2 and BN2->layer3 (exact algebra; FP order differs from
    the reference), keep BN3 as scale/shift, split W4 into main/skip halves,
    zero-pad hidden dims to `lane`, store matmul weights as bf16 and stack the
    small bias/scale vectors into one resident f32 array."""
    def bn_scale_shift(gamma, beta, mean, var):
        s = gamma / jnp.sqrt(var + eps)
        t = beta - mean * s
        return s, t

    s1, t1 = bn_scale_shift(*raw["bn1"])
    s2, t2 = bn_scale_shift(*raw["bn2"])
    s3, t3 = bn_scale_shift(*raw["bn3"])

    # (a*s1 + t1) @ W2 + b2 == a @ (diag(s1) W2) + (t1 @ W2 + b2)
    w2 = raw["w2"] * s1.reshape(-1, 1)
    b2 = raw["b2"] + t1 @ raw["w2"]
    w3 = raw["w3"] * s2.reshape(-1, 1)
    b3 = raw["b3"] + t2 @ raw["w3"]

    in_feats, h1 = raw["w1"].shape
    h2 = raw["w2"].shape[1]
    h3 = raw["w3"].shape[1]
    out = raw["w4"].shape[1]
    w4m, w4s = raw["w4"][:h3], raw["w4"][h3:]

    P1, P2, P3 = (_round_up(d, lane) for d in (h1, h2, h3))
    p_max = max(P1, P2, P3, out)

    def pad2(a, rows, cols, dtype):
        return jnp.pad(
            a, ((0, rows - a.shape[0]), (0, cols - a.shape[1]))).astype(dtype)

    bf = jnp.bfloat16
    vec = jnp.zeros((8, p_max), jnp.float32)
    vec = vec.at[0, :h1].set(raw["b1"][0])
    vec = vec.at[1, :h2].set(b2[0])
    vec = vec.at[2, :h3].set(b3[0])
    vec = vec.at[3, :h3].set(s3[0])
    vec = vec.at[4, :h3].set(t3[0])

    return dict(
        w1=pad2(raw["w1"], in_feats, P1, bf),
        w2=pad2(w2, P1, P2, bf),
        w3=pad2(w3, P2, P3, bf),
        w4m=pad2(w4m, P3, out, bf),
        w4s=w4s.astype(bf),
        vec=vec,
        b4=raw["b4"].astype(jnp.float32),
        dims=(P1, P2, P3),
    )


# ----------------------------------------------------------------------------
# Pure-JAX f32 reference of the eval-mode PyTorch forward (unfolded params)
# ----------------------------------------------------------------------------
def skipnn_reference(x, raw, eps=1e-5):
    def silu(v):
        return v * jax.nn.sigmoid(v)

    def bn(v, p):
        gamma, beta, mean, var = p
        return (v - mean) / jnp.sqrt(var + eps) * gamma + beta

    h = bn(silu(x @ raw["w1"] + raw["b1"]), raw["bn1"])
    h = bn(silu(h @ raw["w2"] + raw["b2"]), raw["bn2"])
    h = bn(silu(h @ raw["w3"] + raw["b3"]), raw["bn3"])
    joined = silu(jnp.concatenate([h, x], axis=1))
    return joined @ raw["w4"] + raw["b4"]


if __name__ == "__main__":
    key = jax.random.PRNGKey(0)
    kx, kp = jax.random.split(key)

    # Small shapes; N=32 gives a 2-step grid (tm_eff=16).
    N, in_feats, h1, h2, h3, out = 32, 16, 32, 32, 24, 1
    x = jax.random.normal(kx, (N, in_feats), jnp.float32)

    raw = make_raw_params(kp, in_feats, h1, h2, h3, out)
    folded = fold_and_pad_params(raw)

    y = skipnn_forward(x, folded)
    jax.block_until_ready(y)

    y_ref = skipnn_reference(x, raw)
    assert y.shape == (N, out)
    # bf16 MXU operands + BN folding -> relaxed tolerance vs pure-f32 reference.
    assert jnp.allclose(y, y_ref, atol=5e-2, rtol=5e-2), "mismatch vs reference"
    print("KERNEL_OK")
</pallas_src>

<mosaic_0001>
module attributes {stable_mosaic.version = 11 : i64} {
  func.func @kernel(%arg0: i32, %arg1: memref<16x16xf32, #tpu.memory_space<vmem>>, %arg2: memref<16x128xbf16, #tpu.memory_space<vmem>>, %arg3: memref<128x128xbf16, #tpu.memory_space<vmem>>, %arg4: memref<128x128xbf16, #tpu.memory_space<vmem>>, %arg5: memref<128x1xbf16, #tpu.memory_space<vmem>>, %arg6: memref<16x1xbf16, #tpu.memory_space<vmem>>, %arg7: memref<8x128xf32, #tpu.memory_space<vmem>>, %arg8: memref<1x1xf32, #tpu.memory_space<vmem>>, %arg9: memref<16x1xf32, #tpu.memory_space<vmem>>) attributes {dimension_semantics = [#tpu.dimension_semantics<parallel>], iteration_bounds = array<i64: 2>, scalar_prefetch = 0 : i64, scratch_operands = 0 : i64, tpu.core_type = #tpu.core_type<tc>, window_params = [{transform_indices = @transform_0, window_bounds = array<i64: 16, 16>}, {pipeline_mode = #tpu.pipeline_mode<synchronous>, transform_indices = @transform_1, window_bounds = array<i64: 16, 128>}, {pipeline_mode = #tpu.pipeline_mode<synchronous>, transform_indices = @transform_2, window_bounds = array<i64: 128, 128>}, {pipeline_mode = #tpu.pipeline_mode<synchronous>, transform_indices = @transform_3, window_bounds = array<i64: 128, 128>}, {pipeline_mode = #tpu.pipeline_mode<synchronous>, transform_indices = @transform_4, window_bounds = array<i64: 128, 1>}, {pipeline_mode = #tpu.pipeline_mode<synchronous>, transform_indices = @transform_5, window_bounds = array<i64: 16, 1>}, {pipeline_mode = #tpu.pipeline_mode<synchronous>, transform_indices = @transform_6, window_bounds = array<i64: 8, 128>}, {pipeline_mode = #tpu.pipeline_mode<synchronous>, transform_indices = @transform_7, window_bounds = array<i64: 1, 1>}, {transform_indices = @transform_8, window_bounds = array<i64: 16, 1>}]} {
    %c0 = arith.constant 0 : index
    %c0_0 = arith.constant 0 : index
    %0 = vector.load %arg1[%c0, %c0_0] : memref<16x16xf32, #tpu.memory_space<vmem>>, vector<16x16xf32>
    %1 = arith.truncf %0 : vector<16x16xf32> to vector<16x16xbf16>
    %c0_1 = arith.constant 0 : index
    %c0_2 = arith.constant 0 : index
    %2 = vector.load %arg7[%c0_1, %c0_2] : memref<8x128xf32, #tpu.memory_space<vmem>>, vector<1x128xf32>
    %c1 = arith.constant 1 : index
    %c0_3 = arith.constant 0 : index
    %3 = vector.load %arg7[%c1, %c0_3] : memref<8x128xf32, #tpu.memory_space<vmem>>, vector<1x128xf32>
    %c2 = arith.constant 2 : index
    %c0_4 = arith.constant 0 : index
    %4 = vector.load %arg7[%c2, %c0_4] : memref<8x128xf32, #tpu.memory_space<vmem>>, vector<1x128xf32>
    %c3 = arith.constant 3 : index
    %c0_5 = arith.constant 0 : index
    %5 = vector.load %arg7[%c3, %c0_5] : memref<8x128xf32, #tpu.memory_space<vmem>>, vector<1x128xf32>
    %c4 = arith.constant 4 : index
    %c0_6 = arith.constant 0 : index
    %6 = vector.load %arg7[%c4, %c0_6] : memref<8x128xf32, #tpu.memory_space<vmem>>, vector<1x128xf32>
    %c0_7 = arith.constant 0 : index
    %c0_8 = arith.constant 0 : index
    %7 = vector.load %arg2[%c0_7, %c0_8] : memref<16x128xbf16, #tpu.memory_space<vmem>>, vector<16x128xbf16>
    %cst = arith.constant dense<0.000000e+00> : vector<16x128xf32>
    %8 = tpu.matmul %1, %7, %cst {dimension_numbers = #tpu.dot_dimension_numbers<[1], [0], [0], [1], [0, 0, 1, 1], [], []>} : vector<16x16xbf16>, vector<16x128xbf16>, vector<16x128xf32> -> vector<16x128xf32>
    %9 = vector.broadcast %2 : vector<1x128xf32> to vector<16x128xf32>
    %10 = arith.addf %8, %9 : vector<16x128xf32>
    %11 = arith.truncf %10 : vector<16x128xf32> to vector<16x128xbf16>
    %12 = arith.negf %11 : vector<16x128xbf16>
    %13 = math.exp %12 : vector<16x128xbf16>
    %cst_9 = arith.constant 1.000000e+00 : bf16
    %14 = vector.broadcast %cst_9 : bf16 to vector<16x128xbf16>
    %15 = arith.addf %14, %13 : vector<16x128xbf16>
    %16 = arith.divf %14, %15 : vector<16x128xbf16>
    %17 = arith.mulf %11, %16 : vector<16x128xbf16>
    %c0_10 = arith.constant 0 : index
    %c0_11 = arith.constant 0 : index
    %18 = vector.load %arg3[%c0_10, %c0_11] : memref<128x128xbf16, #tpu.memory_space<vmem>>, vector<128x128xbf16>
    %cst_12 = arith.constant dense<0.000000e+00> : vector<16x128xf32>
    %19 = tpu.matmul %17, %18, %cst_12 {dimension_numbers = #tpu.dot_dimension_numbers<[1], [0], [0], [1], [0, 0, 1, 1], [], []>} : vector<16x128xbf16>, vector<128x128xbf16>, vector<16x128xf32> -> vector<16x128xf32>
    %20 = vector.broadcast %3 : vector<1x128xf32> to vector<16x128xf32>
    %21 = arith.addf %19, %20 : vector<16x128xf32>
    %22 = arith.truncf %21 : vector<16x128xf32> to vector<16x128xbf16>
    %23 = arith.negf %22 : vector<16x128xbf16>
    %24 = math.exp %23 : vector<16x128xbf16>
    %cst_13 = arith.constant 1.000000e+00 : bf16
    %25 = vector.broadcast %cst_13 : bf16 to vector<16x128xbf16>
    %26 = arith.addf %25, %24 : vector<16x128xbf16>
    %27 = arith.divf %25, %26 : vector<16x128xbf16>
    %28 = arith.mulf %22, %27 : vector<16x128xbf16>
    %c0_14 = arith.constant 0 : index
    %c0_15 = arith.constant 0 : index
    %29 = vector.load %arg4[%c0_14, %c0_15] : memref<128x128xbf16, #tpu.memory_space<vmem>>, vector<128x128xbf16>
    %cst_16 = arith.constant dense<0.000000e+00> : vector<16x128xf32>
    %30 = tpu.matmul %28, %29, %cst_16 {dimension_numbers = #tpu.dot_dimension_numbers<[1], [0], [0], [1], [0, 0, 1, 1], [], []>} : vector<16x128xbf16>, vector<128x128xbf16>, vector<16x128xf32> -> vector<16x128xf32>
    %31 = vector.broadcast %4 : vector<1x128xf32> to vector<16x128xf32>
    %32 = arith.addf %30, %31 : vector<16x128xf32>
    %33 = arith.truncf %32 : vector<16x128xf32> to vector<16x128xbf16>
    %34 = arith.negf %33 : vector<16x128xbf16>
    %35 = math.exp %34 : vector<16x128xbf16>
    %cst_17 = arith.constant 1.000000e+00 : bf16
    %36 = vector.broadcast %cst_17 : bf16 to vector<16x128xbf16>
    %37 = arith.addf %36, %35 : vector<16x128xbf16>
    %38 = arith.divf %36, %37 : vector<16x128xbf16>
    %39 = arith.mulf %33, %38 : vector<16x128xbf16>
    %40 = arith.extf %39 : vector<16x128xbf16> to vector<16x128xf32>
    %41 = vector.broadcast %5 : vector<1x128xf32> to vector<16x128xf32>
    %42 = arith.mulf %40, %41 : vector<16x128xf32>
    %43 = vector.broadcast %6 : vector<1x128xf32> to vector<16x128xf32>
    %44 = arith.addf %42, %43 : vector<16x128xf32>
    %45 = arith.truncf %44 : vector<16x128xf32> to vector<16x128xbf16>
    %46 = arith.negf %45 : vector<16x128xbf16>
    %47 = math.exp %46 : vector<16x128xbf16>
    %cst_18 = arith.constant 1.000000e+00 : bf16
    %48 = vector.broadcast %cst_18 : bf16 to vector<16x128xbf16>
    %49 = arith.addf %48, %47 : vector<16x128xbf16>
    %50 = arith.divf %48, %49 : vector<16x128xbf16>
    %51 = arith.mulf %45, %50 : vector<16x128xbf16>
    %c0_19 = arith.constant 0 : index
    %c0_20 = arith.constant 0 : index
    %52 = vector.load %arg5[%c0_19, %c0_20] : memref<128x1xbf16, #tpu.memory_space<vmem>>, vector<128x1xbf16>
    %cst_21 = arith.constant dense<0.000000e+00> : vector<16x1xf32>
    %53 = tpu.matmul %51, %52, %cst_21 {dimension_numbers = #tpu.dot_dimension_numbers<[1], [0], [0], [1], [0, 0, 1, 1], [], []>} : vector<16x128xbf16>, vector<128x1xbf16>, vector<16x1xf32> -> vector<16x1xf32>
    %54 = arith.truncf %0 : vector<16x16xf32> to vector<16x16xbf16>
    %55 = arith.negf %54 : vector<16x16xbf16>
    %56 = math.exp %55 : vector<16x16xbf16>
    %cst_22 = arith.constant 1.000000e+00 : bf16
    %57 = vector.broadcast %cst_22 : bf16 to vector<16x16xbf16>
    %58 = arith.addf %57, %56 : vector<16x16xbf16>
    %59 = arith.divf %57, %58 : vector<16x16xbf16>
    %60 = arith.mulf %54, %59 : vector<16x16xbf16>
    %c0_23 = arith.constant 0 : index
    %c0_24 = arith.constant 0 : index
    %61 = vector.load %arg6[%c0_23, %c0_24] : memref<16x1xbf16, #tpu.memory_space<vmem>>, vector<16x1xbf16>
    %cst_25 = arith.constant dense<0.000000e+00> : vector<16x1xf32>
    %62 = tpu.matmul %60, %61, %cst_25 {dimension_numbers = #tpu.dot_dimension_numbers<[1], [0], [0], [1], [0, 0, 1, 1], [], []>} : vector<16x16xbf16>, vector<16x1xbf16>, vector<16x1xf32> -> vector<16x1xf32>
    %63 = arith.addf %53, %62 : vector<16x1xf32>
    %c0_26 = arith.constant 0 : index
    %c0_27 = arith.constant 0 : index
    %64 = vector.load %arg8[%c0_26, %c0_27] : memref<1x1xf32, #tpu.memory_space<vmem>>, vector<1x1xf32>
    %65 = vector.broadcast %64 : vector<1x1xf32> to vector<16x1xf32>
    %66 = arith.addf %63, %65 : vector<16x1xf32>
    %c0_28 = arith.constant 0 : index
    %c0_29 = arith.constant 0 : index
    %67 = vector.load %arg9[%c0_28, %c0_29] : memref<16x1xf32, #tpu.memory_space<vmem>>, vector<16x1xf32>
    tpu.vector_store %arg9[%c0_28, %c0_29], %66 {strides = array<i32>} : memref<16x1xf32, #tpu.memory_space<vmem>>, vector<16x1xf32>,
    return
  }
  func.func @transform_0(%arg0: i32) -> (i32, i32) {
    %c0_i32 = arith.constant 0 : i32
    %c0_i32_0 = arith.constant 0 : i32
    return %arg0, %c0_i32 : i32, i32
  }
  func.func @transform_1(%arg0: i32) -> (i32, i32) {
    %c0_i32 = arith.constant 0 : i32
    %c0_i32_0 = arith.constant 0 : i32
    %c0_i32_1 = arith.constant 0 : i32
    return %c0_i32, %c0_i32_0 : i32, i32
  }
  func.func @transform_2(%arg0: i32) -> (i32, i32) {
    %c0_i32 = arith.constant 0 : i32
    %c0_i32_0 = arith.constant 0 : i32
    %c0_i32_1 = arith.constant 0 : i32
    return %c0_i32, %c0_i32_0 : i32, i32
  }
  func.func @transform_3(%arg0: i32) -> (i32, i32) {
    %c0_i32 = arith.constant 0 : i32
    %c0_i32_0 = arith.constant 0 : i32
    %c0_i32_1 = arith.constant 0 : i32
    return %c0_i32, %c0_i32_0 : i32, i32
  }
  func.func @transform_4(%arg0: i32) -> (i32, i32) {
    %c0_i32 = arith.constant 0 : i32
    %c0_i32_0 = arith.constant 0 : i32
    %c0_i32_1 = arith.constant 0 : i32
    return %c0_i32, %c0_i32_0 : i32, i32
  }
  func.func @transform_5(%arg0: i32) -> (i32, i32) {
    %c0_i32 = arith.constant 0 : i32
    %c0_i32_0 = arith.constant 0 : i32
    %c0_i32_1 = arith.constant 0 : i32
    return %c0_i32, %c0_i32_0 : i32, i32
  }
  func.func @transform_6(%arg0: i32) -> (i32, i32) {
    %c0_i32 = arith.constant 0 : i32
    %c0_i32_0 = arith.constant 0 : i32
    %c0_i32_1 = arith.constant 0 : i32
    return %c0_i32, %c0_i32_0 : i32, i32
  }
  func.func @transform_7(%arg0: i32) -> (i32, i32) {
    %c0_i32 = arith.constant 0 : i32
    %c0_i32_0 = arith.constant 0 : i32
    %c0_i32_1 = arith.constant 0 : i32
    return %c0_i32, %c0_i32_0 : i32, i32
  }
  func.func @transform_8(%arg0: i32) -> (i32, i32) {
    %c0_i32 = arith.constant 0 : i32
    %c0_i32_0 = arith.constant 0 : i32
    return %arg0, %c0_i32 : i32, i32
  }
}

</mosaic_0001>

<bundles_post_ra>
// kernel: tpu_custom_call.1
= control target key start
LH: loop header
LB: loop body
LE: loop exit
PB: predicated region body
PF: predicated region fallthrough
CT: control target
= control target key end

     0   :  { %s1422_s0 = inlined_call_operand.vmem [shape: f32[32,16], index: 0, kind: input, shape index: {}]   ;;  %s1423_s1 = inlined_call_operand.hbm [shape: bf16[16,128], index: 1, kind: input, shape index: {}]   ;;  %s1424_s2 = inlined_call_operand.vmem [shape: bf16[128,128], index: 2, kind: input, shape index: {}]   ;;  %s1425_s3 = inlined_call_operand.vmem [shape: bf16[128,128], index: 3, kind: input, shape index: {}]   ;;  %s1426_s4 = inlined_call_operand.vmem [shape: bf16[128,1], index: 4, kind: input, shape index: {}]   ;;  %s1427_s5 = inlined_call_operand.vmem [shape: bf16[16,1], index: 5, kind: input, shape index: {}]   ;;  %s1428_s6 = inlined_call_operand.vmem [shape: f32[8,128], index: 6, kind: input, shape index: {}]   ;;  %s1429_s7 = inlined_call_operand.<no memory space> [shape: f32[1,1], index: 7, kind: input, shape index: {}]   ;;  %s1430_s8 = inlined_call_operand.vmem [shape: f32[32,1], index: 8, kind: output, shape index: {}]  }
   0x1   :  { %v13_v0 = vstv %s1429_s7 }
   0x2   :  { %14 = vst [vmem:[#allocation2] sm:$0x1] %v13_v0 }
   0x3   :  { %15 = vsyncpa [#allocation4], 0  ;;  %s1223_s29 = smov 0  }
   0x4 LB: > { %s906_s30 = sadd.s32 4294967295, %s1168_s29   ;;  %p908_p0 = scmp.ge.s32.totalorder %s1168_s29, 1  ;;  %s1168_s29 = sphi %s1223_s29, %s21_s29  }
   0x5   : > { %p225_p1 = scmp.lt.s32.totalorder %s1168_s29, 3  ;;  %s1170_s9 = smov [#allocation3]  }
   0x6   : > { %s237_s10 = sshll.u32 %s1170_s9, 4  ;;  %p1237_p3 = scmp.eq.s32.totalorder %s906_s30, 0  ;;  %s238_s10 = int_to_ptr.vmem [resolvable:$true] %s237_s10 }
   0x7   : > { %p1231_p2 = pnand %p908_p0, %p225_p1  ;;  %s1130_s15 = scalar_lea.hbm %s1423_s1, 128 }
   0x8   : > { %s1435_s11 = scalar_select %p1237_p3, 1, 0 }
   0x9   : > { %s1434_s7 = scalar_select %p1231_p2, 1, 0 }
   0xa   : > { %p1065_p4 = pneg %p1231_p2  ;;  %p1131_p6 = scmp.ne.s32.totalorder %s1423_s1, %s1130_s15 }
   0xb   : > { %p1137_p10 = scmp.lt.u32.totalorder %s1130_s15, %s1423_s1 }
   0xc   : > { %p1245_p5 = pnand %p1237_p3, %p1065_p4 }
   0xe   : > { %p1132_p7 = pneg %p1245_p5 }
  0x10   : > { %p1133_p8 = pnand %p1132_p7, %p1131_p6 }
  0x12   : > { %p1134_p9 = pneg %p1133_p8 }
  0x14   : > { %p1139_p11 = pnand %p1137_p10, %p1134_p9 }
  0x16   : > { %1142 = shalt.err (!%p1139_p11)
}
  0x17   : > { %s1143_s20 = scalar_lea.vmem %s238_s10, 128  ;;  %p1151_p1 = scmp.lt.s32.totalorder %s238_s10, %s238_s10 }
  0x18   : > { %p1144_p12 = scmp.ne.s32.totalorder %s238_s10, %s1143_s20  ;;  %p1152_p4 = scmp.lt.s32.totalorder %s1143_s20, %s1143_s20 }
  0x1a   : > { %p1146_p13 = pnand %p1144_p12, %p1132_p7  ;;  %p1153_p3 = por %p1152_p4, %p1151_p1 }
  0x1c   : > { %p1147_p0 = pneg %p1146_p13 }
  0x1e   : > { %p1154_p2 = pnand %p1153_p3, %p1147_p0 }
  0x20   : > { %1157 = shalt.err (!%p1154_p2)
}
  0x21   : > { %s1171_s21 = smov 64   ;;  %s1172_s22 = smov 4  }
  0x22   : > { %1068 = dma.hbm_to_vmem [thread:$0]  (!%p1245_p5), %s1423_s1, 128, %s238_s10, [#allocation4], %s1171_s21, %s1171_s21, %s1172_s22  }
  0x23   : > { %p1437_p6 = scmp.ne.s32.totalorder %s1434_s7, 0 }
  0x24   : > { %p1438_p8 = scmp.ne.s32.totalorder (!%p1437_p6), %s1435_s11, 0 }
  0x25   : > { %280 = sbr.rel (%p1437_p6) target bundleno = 1063 (0x427), region = 52 }
  0x2c   : > { %1163 = dma.done.wait (%p1438_p8), [#allocation4], 128  }
  0x2d   : > { %1165 = vsyncadd (%p1438_p8), [#allocation4], 4294967168  ;;  %s913_s25 = sshll.u32 %s906_s30, 1  ;;  %v1173_v1 = vmov 0.0   ;;  %vm1174_vm0 = vmmov 0   ;;  %v1084_v2 = vld [vmem:[#allocation3] sm:$0xff]  }
  0x2e   : > { %989 = vmatprep.subr.bf16.mxu1 %v1173_v1  ;;  %991 = vmatprep.mubr.msk.bf16.mxu1 %vm1174_vm0, %v1173_v1  ;;  %p315_p2 = scmp.lt.s32.totalorder %s913_s25, 3  ;;  %vm348_vm1 = vcmask 130048   ;;  %v1085_v6 = vld [vmem:[%s1424_s2] sm:$0xff]   ;;  %v1086_v7 = vld [vmem:[%s1424_s2 + $0x8] sm:$0xff]   ;;  %v1087_v8 = vld [vmem:[%s1424_s2 + $0x10] sm:$0xff]   ;;  %vm835_vm2 = vcmask 7168  }
  0x2f   : > { %1015 = vmatprep.subr.bf16.mxu0 %v1173_v1  ;;  %1031 = vmatprep.mubr.msk.bf16.mxu0 %vm1174_vm0, %v1173_v1  ;;  %v1088_v9 = vld [vmem:[%s1424_s2 + $0x18] sm:$0xff]   ;;  %v1089_v10 = vld [vmem:[%s1424_s2 + $0x20] sm:$0xff]   ;;  %v1090_v11 = vld [vmem:[%s1424_s2 + $0x28] sm:$0xff]  }
  0x30   : > { %s1440_s25 = smov (!%p315_p2, %s913_s25), 3  ;;  %990 = vmatpush3.bf16.msra.mxu1 %v1084_v2  ;;  %v1091_v12 = vld [vmem:[%s1424_s2 + $0x30] sm:$0xff]   ;;  %v1092_v13 = vld [vmem:[%s1424_s2 + $0x38] sm:$0xff]   ;;  %v917_v14 = vld [vmem:[%s1428_s6] ss:$0 sm:$0xff] }
  0x31   : > { %s914_s26 = sshll.u32 %s1440_s25, 3  ;;  %995 = vmatprep.subr.bf16.mxu1 %v1173_v1  ;;  %v1093_v28 = vld [vmem:[%s1425_s3] sm:$0xff]   ;;  %v1094_v29 = vld [vmem:[%s1425_s3 + $0x8] sm:$0xff]   ;;  %v1095_v30 = vld [vmem:[%s1425_s3 + $0x10] sm:$0xff]  }
  0x32   : > { %s318_s30 = scalar_lea.vmem %s1422_s0, %s914_s26  ;;  %1016 = vmatpush3.bf16.msra.mxu0 %v1093_v28  ;;  %v1096_v31 = vld [vmem:[%s1425_s3 + $0x18] sm:$0xff]   ;;  %v1097_v32 = vld [vmem:[%s1425_s3 + $0x20] sm:$0xff]   ;;  %v1098_v33 = vld [vmem:[%s1425_s3 + $0x28] sm:$0xff]   ;;  %s324_s7 = scalar_lea.vmem %s1430_s8, %s914_s26 }
  0x33   : > { %v328_v3 = vld [vmem:[%s318_s30] sm:$0xff]  ;;  %v329_v4 = vld [vmem:[%s318_s30 + $0x8] sm:$0xff]  ;;  %1017 = vmatprep.subr.bf16.mxu0 %v1173_v1  ;;  %v1099_v34 = vld [vmem:[%s1425_s3 + $0x30] sm:$0xff]  }
  0x34   : > { %v1287_v5 = vpack.c.bf16 %v329_v4, %v328_v3  ;;  %v1100_v35 = vld [vmem:[%s1425_s3 + $0x38] sm:$0xff]   ;;  %v921_v36 = vld [vmem:[%s1428_s6 + $0x1] ss:$0 sm:$0xff]  ;;  %v1102_v56 = vld [vmem:[%s1426_s4 + $0x8] sm:$0xff]  }
  0x35   : > { %v1101_v54 = vld [vmem:[%s1426_s4] sm:$0xff]   ;;  %v1103_v59 = vld [vmem:[%s1426_s4 + $0x10] sm:$0xff]   ;;  %v1104_v60 = vld [vmem:[%s1426_s4 + $0x18] sm:$0xff]  }
  0x36   : > { %992 = vmatmul.mubr.msk.bf16.vlgmr.msra.gmra.mrb[0].mxu1 %vm348_vm1, %v1287_v5  ;;  %1018 = vmatpush3.bf16.msra.mxu0 %v1094_v29  ;;  %v944_v50 = vmul.bf16 3216621497, %v1287_v5  ;;  %v1107_v57 = vld [vmem:[%s1427_s5] sm:$0xff]   ;;  %v1106_v62 = vld [vmem:[%s1426_s4 + $0x28] sm:$0xff]   ;;  %v1108_v63 = vld [vmem:[%s1426_s4 + $0x30] sm:$0xff]  }
  0x37   : > { %1011 = vmatprep.mubr.msk.bf16.mxu1 %vm1174_vm0, %v1173_v1  ;;  %996 = vmatpush3.bf16.msra.mxu1 %v1085_v6  ;;  %v1105_v61 = vld [vmem:[%s1426_s4 + $0x20] sm:$0xff]   ;;  %v1109_v0 = vld [vmem:[%s1426_s4 + $0x38] sm:$0xff]  }
  0x38   : > { %997 = vmatprep.subr.bf16.mxu1 %v1173_v1  ;;  %1019 = vmatprep.subr.bf16.mxu0 %v1173_v1  ;;  %v931_v2 = vld [vmem:[%s1428_s6 + $0x2] ss:$0 sm:$0xff] }
  0x3a   : > { %1020 = vmatpush3.bf16.msra.mxu0 %v1095_v30 }
  0x3b   : > { %998 = vmatpush3.bf16.msra.mxu1 %v1086_v7  ;;  %1021 = vmatprep.subr.bf16.mxu0 %v1173_v1 }
  0x3c   : > { %999 = vmatprep.subr.bf16.mxu1 %v1173_v1 }
  0x3e   : > { %1022 = vmatpush3.bf16.msra.mxu0 %v1096_v31 }
  0x3f   : > { %1000 = vmatpush3.bf16.msra.mxu1 %v1087_v8  ;;  %1023 = vmatprep.subr.bf16.mxu0 %v1173_v1 }
  0x40   : > { %1001 = vmatprep.subr.bf16.mxu1 %v1173_v1 }
  0x42   : > { %1024 = vmatpush3.bf16.msra.mxu0 %v1097_v32 }
  0x43   : > { %1002 = vmatpush3.bf16.msra.mxu1 %v1088_v9  ;;  %1025 = vmatprep.subr.bf16.mxu0 %v1173_v1 }
  0x44   : > { %1003 = vmatprep.subr.bf16.mxu1 %v1173_v1 }
  0x46   : > { %1026 = vmatpush3.bf16.msra.mxu0 %v1098_v33 }
  0x47   : > { %1004 = vmatpush3.bf16.msra.mxu1 %v1089_v10  ;;  %1027 = vmatprep.subr.bf16.mxu0 %v1173_v1 }
  0x48   : > { %1005 = vmatprep.subr.bf16.mxu1 %v1173_v1 }
  0x4a   : > { %1028 = vmatpush3.bf16.msra.mxu0 %v1099_v34 }
  0x4b   : > { %1006 = vmatpush3.bf16.msra.mxu1 %v1090_v11  ;;  %1029 = vmatprep.subr.bf16.mxu0 %v1173_v1 }
  0x4c   : > { %1007 = vmatprep.subr.bf16.mxu1 %v1173_v1 }
  0x4e   : > { %1030 = vmatpush3.bf16.msra.mxu0 %v1100_v35  ;;  %v955_v35 = vld [vmem:[#allocation2] ss:$0 sm:$0xff] }
  0x4f   : > { %1008 = vmatpush3.bf16.msra.mxu1 %v1091_v12  ;;  %1041 = vmatprep.subr.bf16.mxu0 %v1173_v1 }
  0x50   : > { %1009 = vmatprep.subr.bf16.mxu1 %v1173_v1 }
  0x53   : > { %1010 = vmatpush3.bf16.msra.mxu1 %v1092_v13 }
  0x54   : > { %1035 = vmatprep.subr.bf16.mxu1 %v1173_v1 }
 0x109   : > { %v386_v15 = vpop.f32.mrb[0].mxu1 }
 0x10a   : > { %v993_v16 = vpop.f32.mrb[1].mxu1  ;;  %v387_v18 = vadd.f32 %v917_v14, %v386_v15  ;;  %v941_v15 = vld [vmem:[%s1428_s6 + $0x3] ss:$0 sm:$0xff] }
 0x10b   : > { %v389_v17 = vpop.f32.mrb[2].mxu1 }
 0x10c   : > { %v390_v19 = vadd.f32 %v917_v14, %v389_v17  ;;  %v994_v20 = vpop.f32.mrb[3].mxu1 }
 0x10e   : > { %v393_v21 = vpack.c.bf16 %v390_v19, %v387_v18  ;;  %v942_v18 = vld [vmem:[%s1428_s6 + $0x4] ss:$0 sm:$0xff] }
 0x110   : > { %v920_v22 = vmul.bf16 3216621497, %v393_v21 }
 0x112   : > { %1110 = vpow.bf16 %v920_v22 }
 0x11d   : > { %v1111_v23 = vpop.eup %1110 }
 0x11e   : > { %v398_v24 = vadd.bf16 1065369472, %v1111_v23 }
 0x120   : > { %1112 = vrcp.bf16 %v398_v24 }
 0x12b   : > { %v1113_v25 = vpop.eup %1112 }
 0x12c   : > { %v400_v26 = vmul.bf16 1065369472, %v1113_v25 }
 0x12e   : > { %v401_v27 = vmul.bf16 %v400_v26, %v393_v21 }
 0x130   : > { %1012 = vmatmul.mubr.bf16.vlgmr.msra.gmra.mrb[4].mxu1 %v401_v27 }
 0x131   : > { %1037 = vmatprep.mubr.msk.bf16.mxu1 %vm1174_vm0, %v1173_v1  ;;  %1036 = vmatpush3.bf16.msra.mxu1 %v1107_v57 }
 0x203   : > { %v504_v37 = vpop.f32.mrb[4].mxu1 }
 0x204   : > { %v1013_v38 = vpop.f32.mrb[5].mxu1  ;;  %v505_v40 = vadd.f32 %v921_v36, %v504_v37 }
 0x205   : > { %v507_v39 = vpop.f32.mrb[6].mxu1 }
 0x206   : > { %v508_v41 = vadd.f32 %v921_v36, %v507_v39  ;;  %v1014_v42 = vpop.f32.mrb[7].mxu1 }
 0x208   : > { %v511_v43 = vpack.c.bf16 %v508_v41, %v505_v40 }
 0x20a   : > { %v930_v44 = vmul.bf16 3216621497, %v511_v43 }
 0x20c   : > { %1114 = vpow.bf16 %v930_v44 }
 0x217   : > { %v1115_v45 = vpop.eup %1114 }
 0x218   : > { %v516_v46 = vadd.bf16 1065369472, %v1115_v45 }
 0x21a   : > { %1116 = vrcp.bf16 %v516_v46 }
 0x21b   : > { %1118 = vpow.bf16 %v944_v50 }
 0x225   : > { %v1117_v47 = vpop.eup %1116 }
 0x226   : > { %v518_v48 = vmul.bf16 1065369472, %v1117_v47  ;;  %v1119_v51 = vpop.eup %1118 }
 0x227   : > { %v681_v52 = vadd.bf16 1065369472, %v1119_v51 }
 0x228   : > { %v519_v49 = vmul.bf16 %v518_v48, %v511_v43 }
 0x229   : > { %1120 = vrcp.bf16 %v681_v52 }
 0x22a   : > { %1032 = vmatmul.mubr.bf16.vlgmr.msra.gmra.mrb[0].mxu0 %v519_v49 }
 0x22b   : > { %1057 = vmatprep.mubr.msk.bf16.mxu0 %vm1174_vm0, %v1173_v1  ;;  %1042 = vmatpush3.bf16.msra.mxu0 %v1101_v54 }
 0x22c   : > { %1043 = vmatprep.subr.bf16.mxu0 %v1173_v1 }
 0x22f   : > { %1044 = vmatpush3.bf16.msra.mxu0 %v1102_v56 }
 0x230   : > { %1045 = vmatprep.subr.bf16.mxu0 %v1173_v1 }
 0x233   : > { %1046 = vmatpush3.bf16.msra.mxu0 %v1103_v59 }
 0x234   : > { %v1121_v53 = vpop.eup %1120  ;;  %1047 = vmatprep.subr.bf16.mxu0 %v1173_v1 }
 0x235   : > { %v683_v55 = vmul.bf16 1065369472, %v1121_v53 }
 0x237   : > { %v684_v58 = vmul.bf16 %v683_v55, %v1287_v5  ;;  %1048 = vmatpush3.bf16.msra.mxu0 %v1104_v60 }
 0x238   : > { %1049 = vmatprep.subr.bf16.mxu0 %v1173_v1 }
 0x239   : > { %1038 = vmatmul.mubr.msk.bf16.vlgmr.msra.gmra.mrb[8].mxu1 %vm348_vm1, %v684_v58 }
 0x23b   : > { %1050 = vmatpush3.bf16.msra.mxu0 %v1105_v61 }
 0x23c   : > { %1051 = vmatprep.subr.bf16.mxu0 %v1173_v1 }
 0x23f   : > { %1052 = vmatpush3.bf16.msra.mxu0 %v1106_v62 }
 0x240   : > { %1053 = vmatprep.subr.bf16.mxu0 %v1173_v1 }
 0x243   : > { %1054 = vmatpush3.bf16.msra.mxu0 %v1108_v63 }
 0x244   : > { %1055 = vmatprep.subr.bf16.mxu0 %v1173_v1 }
 0x247   : > { %1056 = vmatpush3.bf16.msra.mxu0 %v1109_v0 }
 0x2fd   : > { %v622_v3 = vpop.f32.mrb[0].mxu0 }
 0x2fe   : > { %v1033_v4 = vpop.f32.mrb[1].mxu0  ;;  %v623_v6 = vadd.f32 %v931_v2, %v622_v3 }
 0x2ff   : > { %v625_v5 = vpop.f32.mrb[2].mxu0 }
 0x300   : > { %v626_v7 = vadd.f32 %v931_v2, %v625_v5  ;;  %v1034_v8 = vpop.f32.mrb[3].mxu0 }
 0x302   : > { %v629_v9 = vpack.c.bf16 %v626_v7, %v623_v6 }
 0x304   : > { %v940_v10 = vmul.bf16 3216621497, %v629_v9 }
 0x306   : > { %1122 = vpow.bf16 %v940_v10 }
 0x30c   : > { %v730_v30 = vpop.f32.mrb[8].mxu1 }
 0x30d   : > { %v1039_v31 = vpop.f32.mrb[9].mxu1 }
 0x30e   : > { %v733_v32 = vpop.f32.mrb[10].mxu1 }
 0x30f   : > { %v1040_v33 = vpop.f32.mrb[11].mxu1 }
 0x311   : > { %v1123_v11 = vpop.eup %1122 }
 0x312   : > { %v634_v12 = vadd.bf16 1065369472, %v1123_v11 }
 0x314   : > { %1124 = vrcp.bf16 %v634_v12 }
 0x31f   : > { %v1125_v13 = vpop.eup %1124 }
 0x320   : > { %v636_v14 = vmul.bf16 1065369472, %v1125_v13 }
 0x322   : > { %v637_v1 = vmul.bf16 %v636_v14, %v629_v9 }
 0x324   : > { %v638_v16 = vunpack.c.l.bf16 %v637_v1  ;;  %v639_v17 = vunpack.c.h.bf16 %v637_v1 }
 0x326   : > { %v644_v19 = vmul.f32 %v941_v15, %v638_v16  ;;  %v645_v20 = vmul.f32 %v941_v15, %v639_v17 }
 0x328   : > { %v650_v21 = vadd.f32 %v942_v18, %v644_v19  ;;  %v651_v22 = vadd.f32 %v942_v18, %v645_v20 }
 0x32a   : > { %v652_v23 = vpack.c.bf16 %v651_v22, %v650_v21 }
 0x32c   : > { %v943_v24 = vmul.bf16 3216621497, %v652_v23 }
 0x32e   : > { %1126 = vpow.bf16 %v943_v24 }
 0x339   : > { %v1127_v25 = vpop.eup %1126 }
 0x33a   : > { %v657_v26 = vadd.bf16 1065369472, %v1127_v25 }
 0x33c   : > { %1128 = vrcp.bf16 %v657_v26 }
 0x347   : > { %v1129_v27 = vpop.eup %1128 }
 0x348   : > { %v659_v28 = vmul.bf16 1065369472, %v1129_v27 }
 0x34a   : > { %v660_v29 = vmul.bf16 %v659_v28, %v652_v23 }
 0x34c   : > { %1058 = vmatmul.mubr.bf16.vlgmr.msra.gmra.mrb[4].mxu0 %v660_v29 }
 0x41f   : > { %v819_v34 = vpop.f32.mrb[4].mxu0 }
 0x420   : > { %v820_v36 = vadd.f32 %v819_v34, %v730_v30  ;;  %v1059_v37 = vpop.f32.mrb[5].mxu0 }
 0x421   : > { %v822_v38 = vpop.f32.mrb[6].mxu0 }
 0x422   : > { %v833_v39 = vadd.f32 %v955_v35, %v820_v36  ;;  %v823_v40 = vadd.f32 %v822_v38, %v733_v32  ;;  %v1060_v41 = vpop.f32.mrb[7].mxu0 }
 0x424   : > { %836 = vst.msk [vmem:[%s324_s7] sm:$0xff] %vm835_vm2, %v833_v39  ;;  %v834_v42 = vadd.f32 %v955_v35, %v823_v40 }
 0x426   : > { %837 = vst.msk [vmem:[%s324_s7 + $0x8] sm:$0xff] %vm835_vm2, %v834_v42 }
 0x427 PF: > { %s21_s29 = sadd.s32 1, %s1168_s29  }
 0x428   : > { %p18_p3 = scmp.ge.s32.totalorder %s21_s29, 4  }
 0x42a   :  { %20 = sbr.rel (!%p18_p3) target bundleno = 4 (0x4), region = 87 }
 0x431   :  { %860 = vsyncpa [#allocation4], 1 }
 0x432   :  { %862 = vsyncpa [#allocation4 + $0x1], 1 }

</bundles_post_ra>
